<compile_context>
chip_gen: v5e
topology: v5e:2x2
jax: 0.10.0
libtpu: 0.0.40
codegen_flags: <defaults>
</compile_context>

<pallas_src>
import jax
import jax.numpy as jnp
from jax.experimental import pallas as pl
from jax.experimental.pallas import tpu as pltpu

LANE = 128


def _round_up(x, m):
    return (x + m - 1) // m * m


def _vmem_capacity_bytes():
    try:
        return pltpu.get_tpu_info().vmem_capacity_bytes
    except Exception:
        return 64 << 20                       # v7x-safe fallback


def _vmem_limit_bytes():
    # v7x: 64 MiB/TC -> ~52 MiB;  v5e/v6e: 128 MiB -> ~105 MiB.
    cap = _vmem_capacity_bytes()
    return int(min(cap * 0.82, 110 << 20))


def _stage_vmem_bytes(tm, tk, fp, hp):
    """Conservative per-call VMEM accounting (covers the larger of the stages)."""
    w = max(fp, hp)
    a_tiles    = 2 * tm * tk * 1                       # int8 A tile, double-buffered
    agg_stream = 2 * tk * w * 2                        # bf16 streamed operand, dbl
    row_inputs = 2 * (tm * fp * 4 + tm * hp * 4)       # f32 x / h1 row tiles, dbl
    outputs    = 2 * (tm * hp * 4 + tm * hp * 2 + tm * hp * 4)   # h1 f32+bf16 / h2, dbl
    weights    = 2 * ((fp + hp) * 2 * hp * 4 + (fp + hp) * hp * 4 + 4 * 2 * hp * 4)
    acc        = tm * w * 4                            # accumulator scratch
    return a_tiles + agg_stream + row_inputs + outputs + weights + acc


def _pick_tiles(n0, fp, hp, vmem_limit):
    """Largest (TM, TK) row/contraction tiles that fit the VMEM budget with
    bounded padding.  Footprint is N-independent thanks to K-tiling."""
    budget = int(vmem_limit * 0.6)
    for tm, tk in ((512, 4096), (512, 2048), (512, 1024), (512, 512),
                   (256, 512), (256, 256), (128, 256), (128, 128)):
        t = max(tm, tk)
        n_pad = _round_up(n0, t)
        if t > LANE and (n_pad - n0) > max(n0 // 4, 0):
            continue                                   # too much padding waste
        if _stage_vmem_bytes(tm, tk, fp, hp) <= budget:
            return tm, tk, n_pad
    return 128, 128, _round_up(n0, 128)


# --------------------------------------------------------------------------- #
# Kernels
# --------------------------------------------------------------------------- #
def _stage1_kernel(a_ref, xk_ref, xrow_ref,
                   w_rel_ref, b_rel_ref, w_xcat_ref, b_xcat_ref,
                   h1_ref, h1b_ref, acc_ref):
    """conv1 + relu + residual for one node-row block, K-tiled aggregation."""
    k = pl.program_id(1)

    @pl.when(k == 0)
    def _():
        acc_ref[...] = jnp.zeros_like(acc_ref)

    # int8 -> bf16 upcast on the VPU (hides under MXU/DMA), f32 accumulation.
    a = a_ref[...].astype(jnp.bfloat16)                            # (TM, TK)
    acc_ref[...] += jnp.dot(a, xk_ref[...],
                            preferred_element_type=jnp.float32)    # (TM, Fp)

    @pl.when(k == pl.num_programs(1) - 1)
    def _():
        hp = h1_ref.shape[-1]
        x_row = xrow_ref[...]                                      # (TM, Fp) f32
        # Fused MXU push: x_row @ [W_root1 | W_lin] + [0 | b_lin]
        x_out = (jnp.dot(x_row, w_xcat_ref[...],
                         preferred_element_type=jnp.float32) + b_xcat_ref[...])
        root = x_out[:, :hp]
        x_proj = x_out[:, hp:]
        conv = (jnp.dot(acc_ref[...], w_rel_ref[...],
                        preferred_element_type=jnp.float32)
                + b_rel_ref[...] + root)
        # TODO(synk): dropout(p=0.6) is identity in eval mode; training-mode
        # masking would use pltpu.prng_seed + pltpu.prng_random_bits.
        h1 = jnp.maximum(conv, 0.0) + x_proj
        h1_ref[...] = h1
        h1b_ref[...] = h1.astype(jnp.bfloat16)    # bf16 stream for stage-2 aggregation


def _stage2_kernel(a_ref, h1k_ref, h1row_ref, xrow_ref,
                   w_rel_ref, b_rel_ref, w_cat_ref, b_cat_ref,
                   out_ref, acc_ref):
    """conv2 + relu + residual for one node-row block; x_proj recomputed here."""
    k = pl.program_id(1)

    @pl.when(k == 0)
    def _():
        acc_ref[...] = jnp.zeros_like(acc_ref)

    a = a_ref[...].astype(jnp.bfloat16)
    acc_ref[...] += jnp.dot(a, h1k_ref[...],
                            preferred_element_type=jnp.float32)    # (TM, Hp)

    @pl.when(k == pl.num_programs(1) - 1)
    def _():
        hp = out_ref.shape[-1]
        # Fused MXU push: [h1_row | x_row] @ blockdiag(W_root2, W_lin) + [0 | b_lin]
        cat = jnp.concatenate([h1row_ref[...], xrow_ref[...]], axis=-1)
        cat_out = (jnp.dot(cat, w_cat_ref[...],
                           preferred_element_type=jnp.float32) + b_cat_ref[...])
        root = cat_out[:, :hp]
        x_proj = cat_out[:, hp:]
        conv = (jnp.dot(acc_ref[...], w_rel_ref[...],
                        preferred_element_type=jnp.float32)
                + b_rel_ref[...] + root)
        out_ref[...] = jnp.maximum(conv, 0.0) + x_proj


# --------------------------------------------------------------------------- #
# Wrapper
# --------------------------------------------------------------------------- #
def dgcn_encoder(x, edge_index, params):
    N, F = x.shape
    H = params["w_lin"].shape[1]

    Fp = _round_up(F, LANE)
    Hp = _round_up(H, LANE)
    n0 = _round_up(N, LANE)
    vmem_limit = _vmem_limit_bytes()
    TM, TK, Np = _pick_tiles(n0, Fp, Hp, vmem_limit)
    grid = (Np // TM, Np // TK)

    def pad2(a, rows, cols, dtype=jnp.float32):
        out = jnp.zeros((rows, cols), dtype)
        return out.at[:a.shape[0], :a.shape[1]].set(a.astype(dtype))

    # Dense adjacency built directly in its int8 storage dtype, already padded:
    # A[dst, src] += 1.  Edge multiplicities > 127 would saturate int8.
    # TODO(synk): replace the dense O(N^2) aggregation with a CSR scalar-prefetch
    # gather (PrefetchScalarGridSpec + make_async_copy) for large sparse graphs.
    A8 = jnp.zeros((Np, Np), jnp.int8).at[edge_index[1], edge_index[0]].add(1)
    # TODO(synk): on v7x, evaluate fp8(e4m3) storage for A and the streamed
    # bf16 operands (needs tolerance re-validation).

    x_f32 = pad2(x, Np, Fp)
    x_b16 = x_f32.astype(jnp.bfloat16)

    w_rel1 = pad2(params["w_rel1"], Fp, Hp)
    b_rel1 = pad2(params["b_rel1"], 1, Hp)
    # Stage-1 fused x_row weights: [W_root1 | W_lin], bias [0 | b_lin].
    w_xcat1 = jnp.concatenate([pad2(params["w_root1"], Fp, Hp),
                               pad2(params["w_lin"], Fp, Hp)], axis=1)
    b_lin_p = pad2(params["b_lin"], 1, Hp)
    b_xcat1 = jnp.concatenate([jnp.zeros((1, Hp), jnp.float32), b_lin_p], axis=1)

    w_rel2 = pad2(params["w_rel2"], Hp, Hp)
    b_rel2 = pad2(params["b_rel2"], 1, Hp)
    # Stage-2 fused [h1_row | x_row] weights: blockdiag(W_root2, W_lin), bias [0 | b_lin].
    w_cat2 = jnp.zeros((Hp + Fp, 2 * Hp), jnp.float32)
    w_cat2 = w_cat2.at[:Hp, :Hp].set(pad2(params["w_root2"], Hp, Hp))
    w_cat2 = w_cat2.at[Hp:, Hp:].set(pad2(params["w_lin"], Fp, Hp))
    b_cat2 = b_xcat1

    compiler_params = pltpu.CompilerParams(
        dimension_semantics=("parallel", "arbitrary"),   # rows parallel, K reduction
        vmem_limit_bytes=vmem_limit,
    )

    rows_tm = lambda cols: pl.BlockSpec((TM, cols), lambda i, k: (i, 0))
    rows_tk = lambda cols: pl.BlockSpec((TK, cols), lambda i, k: (k, 0))
    whole = lambda shape: pl.BlockSpec(shape, lambda i, k: (0, 0))
    a_spec = pl.BlockSpec((TM, TK), lambda i, k: (i, k))

    # ---- Stage 1: h1 = relu(conv1(x)) + x_proj ------------------------------
    cost1 = pl.CostEstimate(
        flops=2 * Np * Np * Fp + 2 * Np * Fp * 3 * Hp,
        transcendentals=0,
        bytes_accessed=(Np * Np                              # int8 A
                        + (Np // TM) * Np * Fp * 2           # streamed x bf16
                        + Np * Fp * 4                        # x row tiles
                        + (3 * Fp * Hp + 3 * Hp) * 4         # weights/biases
                        + Np * Hp * (4 + 2)),                # h1 f32 + bf16
    )
    h1_f32, h1_b16 = pl.pallas_call(
        _stage1_kernel,
        out_shape=(jax.ShapeDtypeStruct((Np, Hp), jnp.float32),
                   jax.ShapeDtypeStruct((Np, Hp), jnp.bfloat16)),
        grid_spec=pltpu.PrefetchScalarGridSpec(
            num_scalar_prefetch=0,
            grid=grid,
            in_specs=[a_spec,                 # A tile (int8)
                      rows_tk(Fp),            # x K-block (bf16) for aggregation
                      rows_tm(Fp),            # x row block (f32) for root/lin
                      whole((Fp, Hp)), whole((1, Hp)),          # W_rel1, b_rel1
                      whole((Fp, 2 * Hp)), whole((1, 2 * Hp))], # [W_root1|W_lin], [0|b_lin]
            out_specs=(pl.BlockSpec((TM, Hp), lambda i, k: (i, 0)),
                       pl.BlockSpec((TM, Hp), lambda i, k: (i, 0))),
            scratch_shapes=[pltpu.VMEM((TM, Fp), jnp.float32)],
        ),
        compiler_params=compiler_params,
        cost_estimate=cost1,
    )(A8, x_b16, x_f32, w_rel1, b_rel1, w_xcat1, b_xcat1)

    # ---- Stage 2: h2 = relu(conv2(h1)) + x_proj -----------------------------
    cost2 = pl.CostEstimate(
        flops=2 * Np * Np * Hp + 2 * Np * (Hp + Fp) * 2 * Hp + 2 * Np * Hp * Hp,
        transcendentals=0,
        bytes_accessed=(Np * Np
                        + (Np // TM) * Np * Hp * 2           # streamed h1 bf16
                        + Np * Hp * 4 + Np * Fp * 4          # h1 / x row tiles
                        + ((Hp + Fp) * 2 * Hp + Hp * Hp + 3 * Hp) * 4
                        + Np * Hp * 4),
    )
    h2 = pl.pallas_call(
        _stage2_kernel,
        out_shape=jax.ShapeDtypeStruct((Np, Hp), jnp.float32),
        grid_spec=pltpu.PrefetchScalarGridSpec(
            num_scalar_prefetch=0,
            grid=grid,
            in_specs=[a_spec,                 # A tile (int8)
                      rows_tk(Hp),            # h1 K-block (bf16) for aggregation
                      rows_tm(Hp),            # h1 row block (f32) for root term
                      rows_tm(Fp),            # x row block (f32) to recompute x_proj
                      whole((Hp, Hp)), whole((1, Hp)),              # W_rel2, b_rel2
                      whole((Hp + Fp, 2 * Hp)), whole((1, 2 * Hp))],# blockdiag, [0|b_lin]
            out_specs=pl.BlockSpec((TM, Hp), lambda i, k: (i, 0)),
            scratch_shapes=[pltpu.VMEM((TM, Hp), jnp.float32)],
        ),
        compiler_params=compiler_params,
        cost_estimate=cost2,
    )(A8, h1_b16, h1_f32, x_f32, w_rel2, b_rel2, w_cat2, b_cat2)

    return h2[:N, :H]


# --------------------------------------------------------------------------- #
# Pure-JAX reference (same bf16 aggregation / f32 weight-matmul precision)
# --------------------------------------------------------------------------- #
def reference(x, edge_index, p):
    N = x.shape[0]
    A = jnp.zeros((N, N), jnp.float32).at[edge_index[1], edge_index[0]].add(1.0)
    A16 = A.astype(jnp.bfloat16)
    hi = jax.lax.Precision.HIGHEST
    x_proj = jnp.dot(x, p["w_lin"], precision=hi) + p["b_lin"]
    agg1 = jnp.dot(A16, x.astype(jnp.bfloat16), preferred_element_type=jnp.float32)
    h1 = (jnp.dot(agg1, p["w_rel1"], precision=hi) + p["b_rel1"]
          + jnp.dot(x, p["w_root1"], precision=hi))
    h1 = jnp.maximum(h1, 0.0) + x_proj
    agg2 = jnp.dot(A16, h1.astype(jnp.bfloat16), preferred_element_type=jnp.float32)
    h2 = (jnp.dot(agg2, p["w_rel2"], precision=hi) + p["b_rel2"]
          + jnp.dot(h1, p["w_root2"], precision=hi))
    h2 = jnp.maximum(h2, 0.0) + x_proj
    return h2


if __name__ == "__main__":
    N, NFEATS, NHIDS = 16, 8, 32

    key = jax.random.PRNGKey(0)
    keys = jax.random.split(key, 10)

    x = jax.random.normal(keys[0], (N, NFEATS), dtype=jnp.float32)

    # Deterministic small graph: bidirectional ring.
    src = jnp.arange(N, dtype=jnp.int32)
    dst = (src + 1) % N
    edge_index = jnp.stack([jnp.concatenate([src, dst]),
                            jnp.concatenate([dst, src])], axis=0)       # (2, E)

    def init_w(k, fan_in, fan_out):
        bound = 1.0 / jnp.sqrt(fan_in)
        return jax.random.uniform(k, (fan_in, fan_out), jnp.float32, -bound, bound)

    def init_b(k, fan_in, fan_out):
        bound = 1.0 / jnp.sqrt(fan_in)
        return jax.random.uniform(k, (1, fan_out), jnp.float32, -bound, bound)

    params = {
        # nn.Linear(nfeats, nhids)
        "w_lin":   init_w(keys[1], NFEATS, NHIDS),
        "b_lin":   init_b(keys[2], NFEATS, NHIDS),
        # GraphConv(nfeats, nhids): lin_rel (with bias), lin_root (no bias)
        "w_rel1":  init_w(keys[3], NFEATS, NHIDS),
        "b_rel1":  init_b(keys[4], NFEATS, NHIDS),
        "w_root1": init_w(keys[5], NFEATS, NHIDS),
        # GraphConv(nhids, nhids)
        "w_rel2":  init_w(keys[6], NHIDS, NHIDS),
        "b_rel2":  init_b(keys[7], NHIDS, NHIDS),
        "w_root2": init_w(keys[8], NHIDS, NHIDS),
    }

    out = dgcn_encoder(x, edge_index, params)
    out = jax.block_until_ready(out)

    ref = reference(x, edge_index, params)
    assert out.shape == (N, NHIDS)
    # bf16 aggregation (mirrored in the reference) -> small tolerance.
    assert jnp.allclose(out, ref, atol=3e-3, rtol=3e-3), "mismatch vs reference"

    print("KERNEL_OK")
</pallas_src>

<mosaic_0001>
module attributes {stable_mosaic.version = 11 : i64} {
  func.func @_stage1_kernel(%arg0: i32, %arg1: i32, %arg2: memref<128x128xi8, #tpu.memory_space<vmem>>, %arg3: memref<128x128xbf16, #tpu.memory_space<vmem>>, %arg4: memref<128x128xf32, #tpu.memory_space<vmem>>, %arg5: memref<128x128xf32, #tpu.memory_space<vmem>>, %arg6: memref<1x128xf32, #tpu.memory_space<vmem>>, %arg7: memref<128x256xf32, #tpu.memory_space<vmem>>, %arg8: memref<1x256xf32, #tpu.memory_space<vmem>>, %arg9: memref<128x128xf32, #tpu.memory_space<vmem>>, %arg10: memref<128x128xbf16, #tpu.memory_space<vmem>>, %arg11: memref<128x128xf32, #tpu.memory_space<vmem>>) attributes {dimension_semantics = [#tpu.dimension_semantics<parallel>, #tpu.dimension_semantics<arbitrary>], iteration_bounds = array<i64: 1, 1>, scalar_prefetch = 0 : i64, scratch_operands = 1 : i64, tpu.core_type = #tpu.core_type<tc>, window_params = [{transform_indices = @transform_0, window_bounds = array<i64: 128, 128>}, {transform_indices = @transform_1, window_bounds = array<i64: 128, 128>}, {transform_indices = @transform_2, window_bounds = array<i64: 128, 128>}, {pipeline_mode = #tpu.pipeline_mode<synchronous>, transform_indices = @transform_3, window_bounds = array<i64: 128, 128>}, {pipeline_mode = #tpu.pipeline_mode<synchronous>, transform_indices = @transform_4, window_bounds = array<i64: 1, 128>}, {pipeline_mode = #tpu.pipeline_mode<synchronous>, transform_indices = @transform_5, window_bounds = array<i64: 128, 256>}, {pipeline_mode = #tpu.pipeline_mode<synchronous>, transform_indices = @transform_6, window_bounds = array<i64: 1, 256>}, {transform_indices = @transform_7, window_bounds = array<i64: 128, 128>}, {transform_indices = @transform_8, window_bounds = array<i64: 128, 128>}]} {
    %c0_i32 = arith.constant 0 : i32
    %0 = arith.cmpi eq, %arg1, %c0_i32 : i32
    %1 = arith.extui %0 : i1 to i32
    %c0_i32_0 = arith.constant 0 : i32
    %2 = arith.cmpi ne, %1, %c0_i32_0 : i32
    scf.if %2 {
      %cst_10 = arith.constant 0.000000e+00 : f32
      %13 = vector.broadcast %cst_10 : f32 to vector<128x128xf32>
      %c0_11 = arith.constant 0 : index
      %c0_12 = arith.constant 0 : index
      %14 = vector.load %arg11[%c0_11, %c0_12] : memref<128x128xf32, #tpu.memory_space<vmem>>, vector<128x128xf32>
      tpu.vector_store %arg11[%c0_11, %c0_12], %13 {strides = array<i32>} : memref<128x128xf32, #tpu.memory_space<vmem>>, vector<128x128xf32>,
    } else {
    }
    %c0 = arith.constant 0 : index
    %c0_1 = arith.constant 0 : index
    %3 = vector.load %arg2[%c0, %c0_1] : memref<128x128xi8, #tpu.memory_space<vmem>>, vector<128x128xi8>
    %4 = arith.sitofp %3 : vector<128x128xi8> to vector<128x128xbf16>
    %c0_2 = arith.constant 0 : index
    %c0_3 = arith.constant 0 : index
    %5 = vector.load %arg11[%c0_2, %c0_3] : memref<128x128xf32, #tpu.memory_space<vmem>>, vector<128x128xf32>
    %c0_4 = arith.constant 0 : index
    %c0_5 = arith.constant 0 : index
    %6 = vector.load %arg3[%c0_4, %c0_5] : memref<128x128xbf16, #tpu.memory_space<vmem>>, vector<128x128xbf16>
    %cst = arith.constant dense<0.000000e+00> : vector<128x128xf32>
    %7 = tpu.matmul %4, %6, %cst {dimension_numbers = #tpu.dot_dimension_numbers<[1], [0], [0], [1], [0, 0, 1, 1], [], []>} : vector<128x128xbf16>, vector<128x128xbf16>, vector<128x128xf32> -> vector<128x128xf32>
    %8 = arith.addf %5, %7 : vector<128x128xf32>
    %c0_6 = arith.constant 0 : index
    %c0_7 = arith.constant 0 : index
    %9 = vector.load %arg11[%c0_6, %c0_7] : memref<128x128xf32, #tpu.memory_space<vmem>>, vector<128x128xf32>
    tpu.vector_store %arg11[%c0_6, %c0_7], %8 {strides = array<i32>} : memref<128x128xf32, #tpu.memory_space<vmem>>, vector<128x128xf32>,
    %c0_i32_8 = arith.constant 0 : i32
    %10 = arith.cmpi eq, %arg1, %c0_i32_8 : i32
    %11 = arith.extui %10 : i1 to i32
    %c0_i32_9 = arith.constant 0 : i32
    %12 = arith.cmpi ne, %11, %c0_i32_9 : i32
    scf.if %12 {
      %c0_10 = arith.constant 0 : index
      %c0_11 = arith.constant 0 : index
      %13 = vector.load %arg4[%c0_10, %c0_11] : memref<128x128xf32, #tpu.memory_space<vmem>>, vector<128x128xf32>
      %c0_12 = arith.constant 0 : index
      %c0_13 = arith.constant 0 : index
      %14 = vector.load %arg7[%c0_12, %c0_13] : memref<128x256xf32, #tpu.memory_space<vmem>>, vector<128x256xf32>
      %cst_14 = arith.constant dense<0.000000e+00> : vector<128x256xf32>
      %15 = tpu.matmul %13, %14, %cst_14 {dimension_numbers = #tpu.dot_dimension_numbers<[1], [0], [0], [1], [0, 0, 1, 1], [], []>} : vector<128x128xf32>, vector<128x256xf32>, vector<128x256xf32> -> vector<128x256xf32>
      %c0_15 = arith.constant 0 : index
      %c0_16 = arith.constant 0 : index
      %16 = vector.load %arg8[%c0_15, %c0_16] : memref<1x256xf32, #tpu.memory_space<vmem>>, vector<1x256xf32>
      %17 = vector.broadcast %16 : vector<1x256xf32> to vector<128x256xf32>
      %18 = arith.addf %15, %17 : vector<128x256xf32>
      %19 = vector.extract_strided_slice %18 {offsets = [0, 0], sizes = [128, 128], strides = [1, 1]} : vector<128x256xf32> to vector<128x128xf32>
      %20 = vector.extract_strided_slice %18 {offsets = [0, 128], sizes = [128, 128], strides = [1, 1]} : vector<128x256xf32> to vector<128x128xf32>
      %c0_17 = arith.constant 0 : index
      %c0_18 = arith.constant 0 : index
      %21 = vector.load %arg11[%c0_17, %c0_18] : memref<128x128xf32, #tpu.memory_space<vmem>>, vector<128x128xf32>
      %c0_19 = arith.constant 0 : index
      %c0_20 = arith.constant 0 : index
      %22 = vector.load %arg5[%c0_19, %c0_20] : memref<128x128xf32, #tpu.memory_space<vmem>>, vector<128x128xf32>
      %cst_21 = arith.constant dense<0.000000e+00> : vector<128x128xf32>
      %23 = tpu.matmul %21, %22, %cst_21 {dimension_numbers = #tpu.dot_dimension_numbers<[1], [0], [0], [1], [0, 0, 1, 1], [], []>} : vector<128x128xf32>, vector<128x128xf32>, vector<128x128xf32> -> vector<128x128xf32>
      %c0_22 = arith.constant 0 : index
      %c0_23 = arith.constant 0 : index
      %24 = vector.load %arg6[%c0_22, %c0_23] : memref<1x128xf32, #tpu.memory_space<vmem>>, vector<1x128xf32>
      %25 = vector.broadcast %24 : vector<1x128xf32> to vector<128x128xf32>
      %26 = arith.addf %23, %25 : vector<128x128xf32>
      %27 = arith.addf %26, %19 : vector<128x128xf32>
      %cst_24 = arith.constant 0.000000e+00 : f32
      %28 = vector.broadcast %cst_24 : f32 to vector<128x128xf32>
      %29 = arith.maximumf %27, %28 : vector<128x128xf32>
      %30 = arith.addf %29, %20 : vector<128x128xf32>
      %c0_25 = arith.constant 0 : index
      %c0_26 = arith.constant 0 : index
      %31 = vector.load %arg9[%c0_25, %c0_26] : memref<128x128xf32, #tpu.memory_space<vmem>>, vector<128x128xf32>
      tpu.vector_store %arg9[%c0_25, %c0_26], %30 {strides = array<i32>} : memref<128x128xf32, #tpu.memory_space<vmem>>, vector<128x128xf32>,
      %32 = arith.truncf %30 : vector<128x128xf32> to vector<128x128xbf16>
      %c0_27 = arith.constant 0 : index
      %c0_28 = arith.constant 0 : index
      %33 = vector.load %arg10[%c0_27, %c0_28] : memref<128x128xbf16, #tpu.memory_space<vmem>>, vector<128x128xbf16>
      tpu.vector_store %arg10[%c0_27, %c0_28], %32 {strides = array<i32>} : memref<128x128xbf16, #tpu.memory_space<vmem>>, vector<128x128xbf16>,
    } else {
    }
    return
  }
  func.func @transform_0(%arg0: i32, %arg1: i32) -> (i32, i32) {
    %c0_i32 = arith.constant 0 : i32
    return %arg0, %arg1 : i32, i32
  }
  func.func @transform_1(%arg0: i32, %arg1: i32) -> (i32, i32) {
    %c0_i32 = arith.constant 0 : i32
    %c0_i32_0 = arith.constant 0 : i32
    return %arg1, %c0_i32 : i32, i32
  }
  func.func @transform_2(%arg0: i32, %arg1: i32) -> (i32, i32) {
    %c0_i32 = arith.constant 0 : i32
    %c0_i32_0 = arith.constant 0 : i32
    return %arg0, %c0_i32 : i32, i32
  }
  func.func @transform_3(%arg0: i32, %arg1: i32) -> (i32, i32) {
    %c0_i32 = arith.constant 0 : i32
    %c0_i32_0 = arith.constant 0 : i32
    %c0_i32_1 = arith.constant 0 : i32
    return %c0_i32, %c0_i32_0 : i32, i32
  }
  func.func @transform_4(%arg0: i32, %arg1: i32) -> (i32, i32) {
    %c0_i32 = arith.constant 0 : i32
    %c0_i32_0 = arith.constant 0 : i32
    %c0_i32_1 = arith.constant 0 : i32
    return %c0_i32, %c0_i32_0 : i32, i32
  }
  func.func @transform_5(%arg0: i32, %arg1: i32) -> (i32, i32) {
    %c0_i32 = arith.constant 0 : i32
    %c0_i32_0 = arith.constant 0 : i32
    %c0_i32_1 = arith.constant 0 : i32
    return %c0_i32, %c0_i32_0 : i32, i32
  }
  func.func @transform_6(%arg0: i32, %arg1: i32) -> (i32, i32) {
    %c0_i32 = arith.constant 0 : i32
    %c0_i32_0 = arith.constant 0 : i32
    %c0_i32_1 = arith.constant 0 : i32
    return %c0_i32, %c0_i32_0 : i32, i32
  }
  func.func @transform_7(%arg0: i32, %arg1: i32) -> (i32, i32) {
    %c0_i32 = arith.constant 0 : i32
    %c0_i32_0 = arith.constant 0 : i32
    return %arg0, %c0_i32 : i32, i32
  }
  func.func @transform_8(%arg0: i32, %arg1: i32) -> (i32, i32) {
    %c0_i32 = arith.constant 0 : i32
    %c0_i32_0 = arith.constant 0 : i32
    return %arg0, %c0_i32 : i32, i32
  }
}

</mosaic_0001>

<bundles_post_ra>
// kernel: tpu_custom_call.1
= control target key start
LH: loop header
LB: loop body
LE: loop exit
PB: predicated region body
PF: predicated region fallthrough
CT: control target
= control target key end

     0   :  { %14 = vsyncpa [#allocation4], 0  ;;  %s1198_s0 = inlined_call_operand.hbm [shape: s8[128,128], index: 0, kind: input, shape index: {}]   ;;  %s1199_s1 = inlined_call_operand.hbm [shape: bf16[128,128], index: 1, kind: input, shape index: {}]   ;;  %s1200_s2 = inlined_call_operand.hbm [shape: f32[128,128], index: 2, kind: input, shape index: {}]   ;;  %s1201_s3 = inlined_call_operand.hbm [shape: f32[128,128], index: 3, kind: input, shape index: {}]   ;;  %s1202_s4 = inlined_call_operand.vmem [shape: f32[1,128], index: 4, kind: input, shape index: {}]   ;;  %s1203_s5 = inlined_call_operand.hbm [shape: f32[128,256], index: 5, kind: input, shape index: {}]   ;;  %s1204_s6 = inlined_call_operand.vmem [shape: f32[1,256], index: 6, kind: input, shape index: {}]   ;;  %s1205_s7 = inlined_call_operand.hbm [shape: f32[128,128], index: 7, kind: output, shape index: {0}]   ;;  %s1206_s8 = inlined_call_operand.hbm [shape: bf16[128,128], index: 8, kind: output, shape index: {1}]  }
   0x1   :  { %15 = vsyncpa [#allocation7], 0 }
   0x2   :  { %16 = vsyncpa [#allocation10], 0 }
   0x3   :  { %17 = vsyncpa [#allocation5], 0  ;;  %s36_s29 = sshll.u32 %s1199_s1, 4  ;;  %s37_s29 = int_to_ptr.hbm [resolvable:$true] %s36_s29 }
   0x4   :  { %18 = vsyncpa [#allocation14], 0  ;;  %s1035_s30 = smov [#allocation6]   ;;  %s1036_s10 = smov 64  }
   0x5   :  { %s38_s9 = sshll.u32 %s1035_s30, 4  ;;  %s1037_s11 = smov 4   ;;  %s39_s9 = int_to_ptr.vmem [resolvable:$true] %s38_s9 }
   0x6   :  { %44 = dma.hbm_to_vmem [thread:$0]  %s37_s29, 1024, %s39_s9, [#allocation7], %s1036_s10, %s1036_s10, %s1037_s11  }
   0x7   :  { %s62_s14 = sshll.u32 %s1201_s3, 4  ;;  %s1038_s15 = smov [#allocation9]   ;;  %s63_s14 = int_to_ptr.hbm [resolvable:$true] %s62_s14 }
   0x8   :  { %s64_s16 = sshll.u32 %s1038_s15, 4  ;;  %s23_s18 = sshll.u32 %s1198_s0, 4  ;;  %s65_s16 = int_to_ptr.vmem [resolvable:$true] %s64_s16  ;;  %s24_s18 = int_to_ptr.hbm [resolvable:$true] %s23_s18 }
   0x9   :  { %s1039_s19 = smov 128   ;;  %s1040_s20 = smov 8  }
   0xa   :  { %70 = dma.hbm_to_vmem [thread:$0]  %s63_s14, 2048, %s65_s16, [#allocation10], %s1039_s19, %s1039_s19, %s1040_s20  }
   0xb   :  { %s49_s23 = sshll.u32 %s1200_s2, 4  ;;  %s1041_s3 = smov [#allocation3]   ;;  %s50_s23 = int_to_ptr.hbm [resolvable:$true] %s49_s23 }
   0xc   :  { %s25_s24 = sshll.u32 %s1041_s3, 4  ;;  %s1042_s0 = smov [#allocation8]   ;;  %s26_s24 = int_to_ptr.vmem [resolvable:$true] %s25_s24 }
   0xd   :  { %31 = dma.hbm_to_vmem [thread:$0]  %s24_s18, 512, %s26_s24, [#allocation4], %s1039_s19, %s1039_s19, %s1040_s20  }
   0xe   :  { %s51_s25 = sshll.u32 %s1042_s0, 4  ;;  %s77_s28 = sshll.u32 %s1203_s5, 4  ;;  %s52_s25 = int_to_ptr.vmem [resolvable:$true] %s51_s25  ;;  %s78_s28 = int_to_ptr.hbm [resolvable:$true] %s77_s28 }
   0xf   :  { %57 = dma.hbm_to_vmem [thread:$0]  %s50_s23, 2048, %s52_s25, [#allocation7], %s1039_s19, %s1039_s19, %s1040_s20  }
  0x10   :  { %s1043_s2 = smov [#allocation11]   ;;  %s1044_s30 = smov 256  }
  0x11   :  { %s79_s29 = sshll.u32 %s1043_s2, 4  ;;  %s1045_s9 = smov 16   ;;  %s80_s29 = int_to_ptr.vmem [resolvable:$true] %s79_s29 }
  0x12   :  { %85 = dma.hbm_to_vmem [thread:$0]  %s78_s28, 4096, %s80_s29, [#allocation10], %s1044_s30, %s1044_s30, %s1045_s9  }
  0x13   :  { %1025 = dma.done.wait [#allocation4], 512  }
  0x14   :  { %1026 = vsyncadd [#allocation4], 4294966784 }
  0x15   :  { %1027 = dma.done.wait [#allocation7], 3072  }
  0x16   :  { %1028 = vsyncadd [#allocation7], 4294964224 }
  0x17   :  { %1029 = dma.done.wait [#allocation10], 6144  }
  0x18   :  { %1030 = vsyncadd [#allocation10], 4294961152  ;;  %v795_v0 = vld [vmem:[#allocation6 + $0x38] sm:$0xff]  ;;  %v794_v1 = vld [vmem:[#allocation6 + $0x30] sm:$0xff]  ;;  %s723_s17 = sshll.u32 %s1205_s7, 4  ;;  %s1047_s1 = smov [#allocation13]   ;;  %s724_s17 = int_to_ptr.hbm [resolvable:$true] %s723_s17 }
  0x19   :  { %252 = vmatpush.bf16.msra.mxu0 %v795_v0  ;;  %v793_v2 = vld [vmem:[#allocation6 + $0x28] sm:$0xff]  ;;  %v792_v3 = vld [vmem:[#allocation6 + $0x20] sm:$0xff]  ;;  %v791_v4 = vld [vmem:[#allocation6 + $0x18] sm:$0xff]  ;;  %s734_s18 = sshll.u32 %s1047_s1, 4  ;;  %s736_s23 = sshll.u32 %s1206_s8, 4  ;;  %s735_s18 = int_to_ptr.vmem [resolvable:$true] %s734_s18  ;;  %s737_s23 = int_to_ptr.hbm [resolvable:$true] %s736_s23 }
  0x1a   :  { %v790_v5 = vld [vmem:[#allocation6 + $0x10] sm:$0xff]  ;;  %v128_v6 = vld [vmem:[#allocation3] sm:$0xff]  ;;  %v789_v9 = vld [vmem:[#allocation6 + $0x8] sm:$0xff] }
  0x1b   :  { %v132_v7 = vunpack.c.0.s8 %v128_v6  ;;  %v133_v8 = vunpack.c.1.s8 %v128_v6  ;;  %v788_v12 = vld [vmem:[#allocation6] sm:$0xff]  ;;  %v134_v14 = vunpack.c.2.s8 %v128_v6  ;;  %v135_v15 = vunpack.c.3.s8 %v128_v6  ;;  %v129_v19 = vld [vmem:[#allocation3 + $0x8] sm:$0xff]  ;;  %v551_v30 = vld [vmem:[#allocation9 + $0x78] sm:$0xff] }
  0x1c   :  { %v136_v20 = vunpack.c.0.s8 %v129_v19  ;;  %v137_v21 = vunpack.c.1.s8 %v129_v19  ;;  %v138_v25 = vunpack.c.2.s8 %v129_v19  ;;  %v139_v26 = vunpack.c.3.s8 %v129_v19  ;;  %v130_v31 = vld [vmem:[#allocation3 + $0x10] sm:$0xff]  ;;  %556 = vmatpush.msra.mxu3 %v551_v30  ;;  %v383_v38 = vld [vmem:[#allocation11 + $0xf8] sm:$0xff]  ;;  %v549_v39 = vld [vmem:[#allocation9 + $0x68] sm:$0xff] }
  0x1d   :  { %253 = vmatpush.bf16.msra.mxu0 %v794_v1  ;;  %v148_v10 = vcvt.s32.f32 %v132_v7  ;;  %v149_v11 = vcvt.s32.f32 %v133_v8  ;;  %v150_v16 = vcvt.s32.f32 %v134_v14  ;;  %v151_v17 = vcvt.s32.f32 %v135_v15  ;;  %v550_v37 = vld [vmem:[#allocation9 + $0x70] sm:$0xff]  ;;  %455 = vmatpush.msra.mxu2 %v383_v38  ;;  %v381_v41 = vld [vmem:[#allocation11 + $0xe8] sm:$0xff]  ;;  %v548_v42 = vld [vmem:[#allocation9 + $0x60] sm:$0xff] }
  0x1e   :  { %v152_v22 = vcvt.s32.f32 %v136_v20  ;;  %v153_v23 = vcvt.s32.f32 %v137_v21  ;;  %v154_v27 = vcvt.s32.f32 %v138_v25  ;;  %v155_v28 = vcvt.s32.f32 %v139_v26  ;;  %557 = vmatpush.msra.mxu3 %v550_v37  ;;  %v382_v40 = vld [vmem:[#allocation11 + $0xf0] sm:$0xff]  ;;  %v380_v43 = vld [vmem:[#allocation11 + $0xe0] sm:$0xff]  ;;  %v379_v44 = vld [vmem:[#allocation11 + $0xd8] sm:$0xff] }
  0x1f   :  { %v164_v13 = vpack.c.bf16 %v149_v11, %v148_v10  ;;  %v165_v18 = vpack.c.bf16 %v151_v17, %v150_v16  ;;  %v140_v32 = vunpack.c.0.s8 %v130_v31  ;;  %v141_v33 = vunpack.c.1.s8 %v130_v31  ;;  %390 = vmatpush.msra.mxu1 %v382_v40  ;;  %456 = vmatpush.msra.mxu2 %v381_v41  ;;  %v378_v45 = vld [vmem:[#allocation11 + $0xd0] sm:$0xff]  ;;  %v547_v48 = vld [vmem:[#allocation9 + $0x58] sm:$0xff]  ;;  %v377_v49 = vld [vmem:[#allocation11 + $0xc8] sm:$0xff] }
  0x20   :  { %v166_v24 = vpack.c.bf16 %v153_v23, %v152_v22  ;;  %v167_v29 = vpack.c.bf16 %v155_v28, %v154_v27  ;;  %558 = vmatpush.msra.mxu3 %v549_v39  ;;  %v142_v46 = vunpack.c.2.s8 %v130_v31  ;;  %v143_v47 = vunpack.c.3.s8 %v130_v31  ;;  %v376_v50 = vld [vmem:[#allocation11 + $0xc0] sm:$0xff]  ;;  %v546_v51 = vld [vmem:[#allocation9 + $0x50] sm:$0xff]  ;;  %v375_v52 = vld [vmem:[#allocation11 + $0xb8] sm:$0xff] }
  0x21   :  { %254 = vmatpush.bf16.msra.mxu0 %v793_v2  ;;  %v156_v34 = vcvt.s32.f32 %v140_v32  ;;  %v157_v35 = vcvt.s32.f32 %v141_v33  ;;  %391 = vmatpush.msra.mxu1 %v380_v43  ;;  %v374_v53 = vld [vmem:[#allocation11 + $0xb0] sm:$0xff]  ;;  %v545_v56 = vld [vmem:[#allocation9 + $0x48] sm:$0xff]  ;;  %v372_v58 = vld [vmem:[#allocation11 + $0xa0] sm:$0xff] }
  0x22   :  { %559 = vmatpush.msra.mxu3 %v548_v42  ;;  %457 = vmatpush.msra.mxu2 %v379_v44  ;;  %v158_v54 = vcvt.s32.f32 %v142_v46  ;;  %v159_v55 = vcvt.s32.f32 %v143_v47  ;;  %v373_v57 = vld [vmem:[#allocation11 + $0xa8] sm:$0xff]  ;;  %v544_v59 = vld [vmem:[#allocation9 + $0x40] sm:$0xff]  ;;  %v371_v60 = vld [vmem:[#allocation11 + $0x98] sm:$0xff] }
  0x23   :  { %v168_v36 = vpack.c.bf16 %v157_v35, %v156_v34  ;;  %392 = vmatpush.msra.mxu1 %v378_v45  ;;  %v543_v62 = vld [vmem:[#allocation9 + $0x38] sm:$0xff]  ;;  %v370_v0 = vld [vmem:[#allocation11 + $0x90] sm:$0xff]  ;;  %v369_v1 = vld [vmem:[#allocation11 + $0x88] sm:$0xff] }
  0x24   :  { %560 = vmatpush.msra.mxu3 %v547_v48  ;;  %458 = vmatpush.msra.mxu2 %v377_v49  ;;  %v169_v61 = vpack.c.bf16 %v159_v55, %v158_v54  ;;  %v1120_v63 = vld [vmem:[#allocation3 + $0x18] sm:$0xff]  ;;  %v542_v2 = vld [vmem:[#allocation9 + $0x30] sm:$0xff]  ;;  %v365_v7 = vld [vmem:[#allocation11 + $0x68] sm:$0xff] }
  0x25   :  { %255 = vmatpush.bf16.msra.mxu0 %v792_v3  ;;  %393 = vmatpush.msra.mxu1 %v376_v50  ;;  %v368_v3 = vld [vmem:[#allocation11 + $0x80] sm:$0xff]  ;;  %v366_v6 = vld [vmem:[#allocation11 + $0x70] sm:$0xff]  ;;  %v145_v10 = vunpack.c.1.s8 %v1120_v63  ;;  %v361_v15 = vld [vmem:[#allocation11 + $0x48] sm:$0xff]  ;;  %v146_v32 = vunpack.c.2.s8 %v1120_v63  ;;  %v147_v33 = vunpack.c.3.s8 %v1120_v63 }
  0x26   :  { %561 = vmatpush.msra.mxu3 %v546_v51  ;;  %459 = vmatpush.msra.mxu2 %v375_v52  ;;  %v540_v8 = vld [vmem:[#allocation9 + $0x20] sm:$0xff]  ;;  %v362_v14 = vld [vmem:[#allocation11 + $0x50] sm:$0xff]  ;;  %v359_v20 = vld [vmem:[#allocation11 + $0x38] sm:$0xff] }
  0x27   :  { %394 = vmatpush.msra.mxu1 %v374_v53  ;;  %v364_v11 = vld [vmem:[#allocation11 + $0x60] sm:$0xff]  ;;  %v538_v16 = vld [vmem:[#allocation9 + $0x10] sm:$0xff]  ;;  %v537_v21 = vld [vmem:[#allocation9 + $0x8] sm:$0xff]  ;;  %v162_v35 = vcvt.s32.f32 %v146_v32 }
  0x28   :  { %562 = vmatpush.msra.mxu3 %v545_v56  ;;  %460 = vmatpush.msra.mxu2 %v373_v57  ;;  %v360_v19 = vld [vmem:[#allocation11 + $0x40] sm:$0xff]  ;;  %v358_v23 = vld [vmem:[#allocation11 + $0x30] sm:$0xff]  ;;  %v355_v27 = vld [vmem:[#allocation11 + $0x18] sm:$0xff] }
  0x29   :  { %256 = vmatpush.bf16.msra.mxu0 %v791_v4  ;;  %395 = vmatpush.msra.mxu1 %v372_v58  ;;  %v367_v4 = vld [vmem:[#allocation11 + $0x78] sm:$0xff]  ;;  %v536_v25 = vld [vmem:[#allocation9] sm:$0xff]  ;;  %v354_v28 = vld [vmem:[#allocation11 + $0x10] sm:$0xff] }
  0x2a   :  { %563 = vmatpush.msra.mxu3 %v544_v59  ;;  %461 = vmatpush.msra.mxu2 %v371_v60  ;;  %v356_v26 = vld [vmem:[#allocation11 + $0x20] sm:$0xff]  ;;  %v337_v34 = vld [vmem:[#allocation8 + $0x8] sm:$0xff]  ;;  %v338_v38 = vld [vmem:[#allocation8 + $0x10] sm:$0xff] }
  0x2b   :  { %396 = vmatpush.msra.mxu1 %v370_v0  ;;  %v336_v30 = vld [vmem:[#allocation8] sm:$0xff]  ;;  %v339_v39 = vld [vmem:[#allocation8 + $0x18] sm:$0xff]  ;;  %v341_v43 = vld [vmem:[#allocation8 + $0x28] sm:$0xff] }
  0x2c   :  { %564 = vmatpush.msra.mxu3 %v543_v62  ;;  %462 = vmatpush.msra.mxu2 %v369_v1  ;;  %v352_v31 = vld [vmem:[#allocation11] sm:$0xff]  ;;  %v342_v45 = vld [vmem:[#allocation8 + $0x30] sm:$0xff]  ;;  %v343_v47 = vld [vmem:[#allocation8 + $0x38] sm:$0xff] }
  0x2d   :  { %257 = vmatpush.bf16.msra.mxu0 %v790_v5  ;;  %v541_v5 = vld [vmem:[#allocation9 + $0x28] sm:$0xff]  ;;  %397 = vmatpush.msra.mxu1 %v368_v3  ;;  %v340_v41 = vld [vmem:[#allocation8 + $0x20] sm:$0xff]  ;;  %v346_v53 = vld [vmem:[#allocation8 + $0x50] sm:$0xff] }
  0x2e   :  { %565 = vmatpush.msra.mxu3 %v542_v2  ;;  %463 = vmatpush.msra.mxu2 %v367_v4  ;;  %v344_v49 = vld [vmem:[#allocation8 + $0x40] sm:$0xff]  ;;  %v345_v51 = vld [vmem:[#allocation8 + $0x48] sm:$0xff]  ;;  %v347_v55 = vld [vmem:[#allocation8 + $0x58] sm:$0xff] }
  0x2f   :  { %398 = vmatpush.msra.mxu1 %v366_v6  ;;  %v348_v57 = vld [vmem:[#allocation8 + $0x60] sm:$0xff]  ;;  %v349_v59 = vld [vmem:[#allocation8 + $0x68] sm:$0xff] }
  0x30   :  { %566 = vmatpush.msra.mxu3 %v541_v5  ;;  %464 = vmatpush.msra.mxu2 %v365_v7 }
  0x31   :  { %258 = vmatpush.bf16.msra.mxu0 %v789_v9  ;;  %v144_v9 = vunpack.c.0.s8 %v1120_v63  ;;  %399 = vmatpush.msra.mxu1 %v364_v11  ;;  %v351_v63 = vld [vmem:[#allocation8 + $0x78] sm:$0xff] }
  0x32   :  { %567 = vmatpush.msra.mxu3 %v540_v8 }
  0x33   :  { %v160_v17 = vcvt.s32.f32 %v144_v9  ;;  %400 = vmatpush.msra.mxu1 %v362_v14 }
  0x35   :  { %259 = vmatpush.bf16.msra.mxu0 %v788_v12  ;;  %v363_v12 = vld [vmem:[#allocation11 + $0x58] sm:$0xff]  ;;  %401 = vmatpush.msra.mxu1 %v360_v19 }
  0x36   :  { %465 = vmatpush.msra.mxu2 %v363_v12 }
  0x37   :  { %402 = vmatpush.msra.mxu1 %v358_v23 }
  0x38   :  { %260 = vmatmul.bf16.vlgmr.msra.gmra.mxu0 %v164_v13  ;;  %v539_v13 = vld [vmem:[#allocation9 + $0x18] sm:$0xff]  ;;  %466 = vmatpush.msra.mxu2 %v361_v15 }
  0x39   :  { %568 = vmatpush.msra.mxu3 %v539_v13  ;;  %403 = vmatpush.msra.mxu1 %v356_v26  ;;  %v1134_v13 = vld [vmem:[%s1202_s4] ss:$0 sm:$0xff]  ;;  %s1046_s4 = smov [#allocation12]  }
  0x3a   :  { %467 = vmatpush.msra.mxu2 %v359_v20 }
  0x3b   :  { %569 = vmatpush.msra.mxu3 %v538_v16  ;;  %404 = vmatpush.msra.mxu1 %v354_v28 }
  0x3d   :  { %570 = vmatpush.msra.mxu3 %v537_v21  ;;  %405 = vmatpush.msra.mxu1 %v352_v31 }
  0x3e   :  { %406 = vmatmul.f32.vlgmr.msra.gmra.mxu1 %v336_v30 }
  0x3f   :  { %571 = vmatpush.msra.mxu3 %v536_v25 }
  0x46   :  { %409 = vmatmul.f32.gmra.mxu1 %v337_v34 }
  0x48   :  { %265 = vmatmul.bf16.gmra.mxu0 %v165_v18  ;;  %v161_v18 = vcvt.s32.f32 %v145_v10  ;;  %v384_v10 = vld [vmem:[%s1204_s6] sm:$0x3]  ;;  %s721_s6 = sshll.u32 %s1046_s4, 4  ;;  %s722_s6 = int_to_ptr.vmem [resolvable:$true] %s721_s6 }
  0x49   :  { %v1129_v11 = vperm.slane %v384_v10, 0  ;;  %v1137_v15 = vperm.slane %v384_v10, 1 }
  0x4a   :  { %v170_v22 = vpack.c.bf16 %v161_v18, %v160_v17 }
  0x4e   :  { %412 = vmatmul.f32.gmra.mxu1 %v338_v38 }
  0x56   :  { %415 = vmatmul.f32.gmra.mxu1 %v339_v39 }
  0x58   :  { %270 = vmatmul.bf16.gmra.mxu0 %v166_v24  ;;  %v357_v24 = vld [vmem:[#allocation11 + $0x28] sm:$0xff] }
  0x59   :  { %468 = vmatpush.msra.mxu2 %v357_v24 }
  0x5b   :  { %469 = vmatpush.msra.mxu2 %v355_v27 }
  0x5e   :  { %418 = vmatmul.f32.gmra.mxu1 %v340_v41 }
  0x66   :  { %421 = vmatmul.f32.gmra.mxu1 %v341_v43 }
  0x68   :  { %275 = vmatmul.bf16.gmra.mxu0 %v167_v29  ;;  %v353_v29 = vld [vmem:[#allocation11 + $0x8] sm:$0xff] }
  0x69   :  { %470 = vmatpush.msra.mxu2 %v353_v29 }
  0x6a   :  { %471 = vmatmul.f32.vlgmr.msra.gmra.mxu2 %v336_v30 }
  0x6e   :  { %424 = vmatmul.f32.gmra.mxu1 %v342_v45 }
  0x72   :  { %474 = vmatmul.f32.gmra.mxu2 %v337_v34 }
  0x76   :  { %427 = vmatmul.f32.gmra.mxu1 %v343_v47 }
  0x78   :  { %280 = vmatmul.bf16.gmra.mxu0 %v168_v36  ;;  %v163_v36 = vcvt.s32.f32 %v147_v33 }
  0x7a   :  { %v171_v37 = vpack.c.bf16 %v163_v36, %v162_v35  ;;  %477 = vmatmul.f32.gmra.mxu2 %v338_v38 }
  0x7e   :  { %430 = vmatmul.f32.gmra.mxu1 %v344_v49 }
  0x82   :  { %480 = vmatmul.f32.gmra.mxu2 %v339_v39 }
  0x86   :  { %433 = vmatmul.f32.gmra.mxu1 %v345_v51 }
  0x88   :  { %285 = vmatmul.bf16.gmra.mxu0 %v169_v61  ;;  %v350_v61 = vld [vmem:[#allocation8 + $0x70] sm:$0xff] }
  0x8a   :  { %483 = vmatmul.f32.gmra.mxu2 %v340_v41 }
  0x8e   :  { %436 = vmatmul.f32.gmra.mxu1 %v346_v53 }
  0x92   :  { %486 = vmatmul.f32.gmra.mxu2 %v341_v43 }
  0x96   :  { %439 = vmatmul.f32.gmra.mxu1 %v347_v55 }
  0x98   :  { %290 = vmatmul.bf16.gmra.mxu0 %v170_v22 }
  0x9a   :  { %489 = vmatmul.f32.gmra.mxu2 %v342_v45 }
  0x9e   :  { %442 = vmatmul.f32.gmra.mxu1 %v348_v57 }
  0xa2   :  { %492 = vmatmul.f32.gmra.mxu2 %v343_v47 }
  0xa6   :  { %445 = vmatmul.f32.gmra.mxu1 %v349_v59 }
  0xa8   :  { %295 = vmatmul.bf16.gmra.mxu0 %v171_v37 }
  0xaa   :  { %495 = vmatmul.f32.gmra.mxu2 %v344_v49 }
  0xae   :  { %448 = vmatmul.f32.gmra.mxu1 %v350_v61 }
  0xb2   :  { %498 = vmatmul.f32.gmra.mxu2 %v345_v51 }
  0xb5   :  { %v261_v40 = vpop.f32.mrf.mxu0 }
  0xb6   :  { %572 = vmatmul.f32.vlgmr.msra.gmra.mxu3 %v261_v40  ;;  %451 = vmatmul.f32.gmra.mxu1 %v351_v63 }
  0xba   :  { %501 = vmatmul.f32.gmra.mxu2 %v346_v53 }
  0xbb   :  { %v407_v1 = vpop.f32.mrf.mxu1 }
  0xbc   :  { %v408_v14 = vadd.f32 %v407_v1, %v1129_v11 }
  0xbd   :  { %v263_v42 = vpop.f32.mrf.mxu0 }
  0xbe   :  { %575 = vmatmul.f32.gmra.mxu3 %v263_v42 }
  0xc2   :  { %504 = vmatmul.f32.gmra.mxu2 %v347_v55 }
  0xc3   :  { %v410_v4 = vpop.f32.mrf.mxu1 }
  0xc4   :  { %v411_v24 = vadd.f32 %v410_v4, %v1129_v11 }
  0xc5   :  { %v266_v44 = vpop.f32.mrf.mxu0 }
  0xc6   :  { %578 = vmatmul.f32.gmra.mxu3 %v266_v44 }
  0xca   :  { %507 = vmatmul.f32.gmra.mxu2 %v348_v57 }
  0xcb   :  { %v413_v7 = vpop.f32.mrf.mxu1 }
  0xcc   :  { %v414_v32 = vadd.f32 %v413_v7, %v1129_v11 }
  0xcd   :  { %v268_v46 = vpop.f32.mrf.mxu0 }
  0xce   :  { %581 = vmatmul.f32.gmra.mxu3 %v268_v46 }
  0xd2   :  { %510 = vmatmul.f32.gmra.mxu2 %v349_v59 }
  0xd3   :  { %v416_v12 = vpop.f32.mrf.mxu1 }
  0xd4   :  { %v417_v42 = vadd.f32 %v416_v12, %v1129_v11 }
  0xd5   :  { %v271_v48 = vpop.f32.mrf.mxu0 }
  0xd6   :  { %584 = vmatmul.f32.gmra.mxu3 %v271_v48 }
  0xda   :  { %513 = vmatmul.f32.gmra.mxu2 %v350_v61 }
  0xdb   :  { %v419_v22 = vpop.f32.mrf.mxu1 }
  0xdc   :  { %v420_v51 = vadd.f32 %v419_v22, %v1129_v11 }
  0xdd   :  { %v273_v50 = vpop.f32.mrf.mxu0 }
  0xde   :  { %587 = vmatmul.f32.gmra.mxu3 %v273_v50 }
  0xe2   :  { %516 = vmatmul.f32.gmra.mxu2 %v351_v63 }
  0xe3   :  { %v422_v34 = vpop.f32.mrf.mxu1 }
  0xe5   :  { %v276_v52 = vpop.f32.mrf.mxu0 }
  0xe6   :  { %590 = vmatmul.f32.gmra.mxu3 %v276_v52 }
  0xeb   :  { %v425_v45 = vpop.f32.mrf.mxu1 }
  0xed   :  { %v278_v54 = vpop.f32.mrf.mxu0  ;;  %v472_v3 = vpop.f32.mrf.mxu2 }
  0xee   :  { %593 = vmatmul.f32.gmra.mxu3 %v278_v54  ;;  %v473_v20 = vadd.f32 %v472_v3, %v1137_v15 }
  0xf3   :  { %v428_v57 = vpop.f32.mrf.mxu1 }
  0xf5   :  { %v281_v56 = vpop.f32.mrf.mxu0  ;;  %v475_v6 = vpop.f32.mrf.mxu2 }
  0xf6   :  { %596 = vmatmul.f32.gmra.mxu3 %v281_v56  ;;  %v476_v29 = vadd.f32 %v475_v6, %v1137_v15 }
  0xfb   :  { %v431_v3 = vpop.f32.mrf.mxu1 }
  0xfd   :  { %v283_v58 = vpop.f32.mrf.mxu0  ;;  %v478_v9 = vpop.f32.mrf.mxu2 }
  0xfe   :  { %599 = vmatmul.f32.gmra.mxu3 %v283_v58  ;;  %v479_v38 = vadd.f32 %v478_v9, %v1137_v15 }
 0x105   :  { %v286_v60 = vpop.f32.mrf.mxu0  ;;  %v481_v17 = vpop.f32.mrf.mxu2 }
 0x106   :  { %602 = vmatmul.f32.gmra.mxu3 %v286_v60  ;;  %v482_v47 = vadd.f32 %v481_v17, %v1137_v15  ;;  %v423_v60 = vadd.f32 %v422_v34, %v1129_v11  ;;  %v429_v17 = vadd.f32 %v428_v57, %v1129_v11 }
 0x10d   :  { %v288_v62 = vpop.f32.mrf.mxu0  ;;  %v484_v27 = vpop.f32.mrf.mxu2 }
 0x10e   :  { %605 = vmatmul.f32.gmra.mxu3 %v288_v62  ;;  %v485_v56 = vadd.f32 %v484_v27, %v1137_v15 }
 0x115   :  { %v291_v0 = vpop.f32.mrf.mxu0  ;;  %v487_v39 = vpop.f32.mrf.mxu2 }
 0x116   :  { %608 = vmatmul.f32.gmra.mxu3 %v291_v0  ;;  %v488_v1 = vadd.f32 %v487_v39, %v1137_v15 }
 0x11d   :  { %v293_v2 = vpop.f32.mrf.mxu0  ;;  %v490_v49 = vpop.f32.mrf.mxu2 }
 0x11e   :  { %611 = vmatmul.f32.gmra.mxu3 %v293_v2  ;;  %v491_v12 = vadd.f32 %v490_v49, %v1137_v15 }
 0x125   :  { %v296_v5 = vpop.f32.mrf.mxu0  ;;  %v493_v62 = vpop.f32.mrf.mxu2 }
 0x126   :  { %614 = vmatmul.f32.gmra.mxu3 %v296_v5  ;;  %v426_v5 = vadd.f32 %v425_v45, %v1129_v11  ;;  %v494_v22 = vadd.f32 %v493_v62, %v1137_v15 }
 0x12d   :  { %v298_v8 = vpop.f32.mrf.mxu0  ;;  %v496_v9 = vpop.f32.mrf.mxu2 }
 0x12e   :  { %617 = vmatmul.f32.gmra.mxu3 %v298_v8 }
 0x139   :  { %v573_v16 = vpop.f32.mrf.mxu3 }
 0x13a   :  { %v574_v18 = vadd.f32 %v1134_v13, %v573_v16 }
 0x13c   :  { %v621_v19 = vadd.f32 %v574_v18, %v408_v14 }
 0x13e   :  { %v637_v21 = vmax.f32 %v621_v19, 0.0  ;;  %v434_v19 = vpop.f32.mrf.mxu1 }
 0x140   :  { %v653_v23 = vadd.f32 %v637_v21, %v473_v20 }
 0x141   :  { %v576_v25 = vpop.f32.mrf.mxu3 }
 0x142   :  { %669 = vst [vmem:[#allocation12] sm:$0xff] %v653_v23  ;;  %v577_v26 = vadd.f32 %v1134_v13, %v576_v25 }
 0x144   :  { %v622_v28 = vadd.f32 %v577_v26, %v411_v24  ;;  %v432_v26 = vadd.f32 %v431_v3, %v1129_v11 }
 0x146   :  { %v638_v30 = vmax.f32 %v622_v28, 0.0 }
 0x148   :  { %v654_v31 = vadd.f32 %v638_v30, %v476_v29  ;;  %v437_v30 = vpop.f32.mrf.mxu1 }
 0x149   :  { %v579_v33 = vpop.f32.mrf.mxu3 }
 0x14a   :  { %670 = vst [vmem:[#allocation12 + $0x8] sm:$0xff] %v654_v31  ;;  %v799_v35 = vpack.c.bf16 %v654_v31, %v653_v23  ;;  %v580_v36 = vadd.f32 %v1134_v13, %v579_v33  ;;  %v499_v23 = vpop.f32.mrf.mxu2 }
 0x14c   :  { %800 = vst [vmem:[#allocation13] sm:$0xff] %v799_v35   ;;  %v623_v37 = vadd.f32 %v580_v36, %v414_v32  ;;  %v497_v32 = vadd.f32 %v496_v9, %v1137_v15  ;;  %v435_v36 = vadd.f32 %v434_v19, %v1129_v11 }
 0x14e   :  { %v639_v40 = vmax.f32 %v623_v37, 0.0 }
 0x150   :  { %v655_v41 = vadd.f32 %v639_v40, %v479_v38  ;;  %v500_v40 = vadd.f32 %v499_v23, %v1137_v15 }
 0x151   :  { %v582_v43 = vpop.f32.mrf.mxu3 }
 0x152   :  { %671 = vst [vmem:[#allocation12 + $0x10] sm:$0xff] %v655_v41  ;;  %v583_v44 = vadd.f32 %v1134_v13, %v582_v43  ;;  %v502_v34 = vpop.f32.mrf.mxu2 }
 0x154   :  { %v624_v46 = vadd.f32 %v583_v44, %v417_v42  ;;  %v438_v44 = vadd.f32 %v437_v30, %v1129_v11 }
 0x156   :  { %v640_v48 = vmax.f32 %v624_v46, 0.0 }
 0x158   :  { %v656_v50 = vadd.f32 %v640_v48, %v482_v47 }
 0x159   :  { %v585_v52 = vpop.f32.mrf.mxu3 }
 0x15a   :  { %672 = vst [vmem:[#allocation12 + $0x18] sm:$0xff] %v656_v50  ;;  %v804_v53 = vpack.c.bf16 %v656_v50, %v655_v41  ;;  %v586_v54 = vadd.f32 %v1134_v13, %v585_v52  ;;  %v440_v41 = vpop.f32.mrf.mxu1  ;;  %v505_v46 = vpop.f32.mrf.mxu2  ;;  %v503_v50 = vadd.f32 %v502_v34, %v1137_v15 }
 0x15c   :  { %836 = vst [vmem:[#allocation13 + $0x8] sm:$0xff] %v804_v53   ;;  %v625_v55 = vadd.f32 %v586_v54, %v420_v51  ;;  %v441_v54 = vadd.f32 %v440_v41, %v1129_v11 }
 0x15e   :  { %v641_v58 = vmax.f32 %v625_v55, 0.0 }
 0x160   :  { %v657_v59 = vadd.f32 %v641_v58, %v485_v56 }
 0x161   :  { %v588_v61 = vpop.f32.mrf.mxu3 }
 0x162   :  { %673 = vst [vmem:[#allocation12 + $0x20] sm:$0xff] %v657_v59  ;;  %v589_v63 = vadd.f32 %v1134_v13, %v588_v61  ;;  %v443_v52 = vpop.f32.mrf.mxu1  ;;  %v508_v57 = vpop.f32.mrf.mxu2 }
 0x163   :  { %v444_v62 = vadd.f32 %v443_v52, %v1129_v11 }
 0x164   :  { %v626_v0 = vadd.f32 %v589_v63, %v423_v60 }
 0x166   :  { %v642_v2 = vmax.f32 %v626_v0, 0.0 }
 0x168   :  { %v658_v4 = vadd.f32 %v642_v2, %v488_v1 }
 0x169   :  { %v591_v6 = vpop.f32.mrf.mxu3 }
 0x16a   :  { %674 = vst [vmem:[#allocation12 + $0x28] sm:$0xff] %v658_v4  ;;  %v809_v7 = vpack.c.bf16 %v658_v4, %v657_v59  ;;  %v592_v8 = vadd.f32 %v1134_v13, %v591_v6  ;;  %v506_v59 = vadd.f32 %v505_v46, %v1137_v15  ;;  %v446_v0 = vpop.f32.mrf.mxu1  ;;  %v509_v4 = vadd.f32 %v508_v57, %v1137_v15 }
 0x16c   :  { %837 = vst [vmem:[#allocation13 + $0x10] sm:$0xff] %v809_v7   ;;  %v627_v10 = vadd.f32 %v592_v8, %v426_v5  ;;  %v511_v5 = vpop.f32.mrf.mxu2  ;;  %v447_v8 = vadd.f32 %v446_v0, %v1129_v11 }
 0x16e   :  { %v643_v14 = vmax.f32 %v627_v10, 0.0 }
 0x170   :  { %v659_v16 = vadd.f32 %v643_v14, %v491_v12 }
 0x171   :  { %v594_v18 = vpop.f32.mrf.mxu3 }
 0x172   :  { %675 = vst [vmem:[#allocation12 + $0x30] sm:$0xff] %v659_v16  ;;  %v595_v20 = vadd.f32 %v1134_v13, %v594_v18  ;;  %v449_v12 = vpop.f32.mrf.mxu1 }
 0x174   :  { %v628_v21 = vadd.f32 %v595_v20, %v429_v17  ;;  %v514_v18 = vpop.f32.mrf.mxu2  ;;  %v450_v20 = vadd.f32 %v449_v12, %v1129_v11 }
 0x176   :  { %v644_v24 = vmax.f32 %v628_v21, 0.0 }
 0x178   :  { %v660_v25 = vadd.f32 %v644_v24, %v494_v22 }
 0x179   :  { %v597_v27 = vpop.f32.mrf.mxu3 }
 0x17a   :  { %676 = vst [vmem:[#allocation12 + $0x38] sm:$0xff] %v660_v25  ;;  %v814_v28 = vpack.c.bf16 %v660_v25, %v659_v16  ;;  %v598_v29 = vadd.f32 %v1134_v13, %v597_v27  ;;  %v512_v16 = vadd.f32 %v511_v5, %v1137_v15  ;;  %v515_v25 = vadd.f32 %v514_v18, %v1137_v15 }
 0x17c   :  { %838 = vst [vmem:[#allocation13 + $0x18] sm:$0xff] %v814_v28   ;;  %v629_v31 = vadd.f32 %v598_v29, %v432_v26  ;;  %v452_v26 = vpop.f32.mrf.mxu1 }
 0x17d   :  { %v453_v29 = vadd.f32 %v452_v26, %v1129_v11 }
 0x17e   :  { %v645_v33 = vmax.f32 %v629_v31, 0.0  ;;  %v517_v31 = vpop.f32.mrf.mxu2 }
 0x17f   :  { %v518_v34 = vadd.f32 %v517_v31, %v1137_v15 }
 0x180   :  { %v661_v35 = vadd.f32 %v645_v33, %v497_v32 }
 0x181   :  { %v600_v37 = vpop.f32.mrf.mxu3 }
 0x182   :  { %677 = vst [vmem:[#allocation12 + $0x40] sm:$0xff] %v661_v35  ;;  %v601_v38 = vadd.f32 %v1134_v13, %v600_v37 }
 0x184   :  { %v630_v39 = vadd.f32 %v601_v38, %v435_v36 }
 0x186   :  { %v646_v42 = vmax.f32 %v630_v39, 0.0 }
 0x188   :  { %v662_v43 = vadd.f32 %v646_v42, %v500_v40 }
 0x189   :  { %v603_v45 = vpop.f32.mrf.mxu3 }
 0x18a   :  { %678 = vst [vmem:[#allocation12 + $0x48] sm:$0xff] %v662_v43  ;;  %v819_v47 = vpack.c.bf16 %v662_v43, %v661_v35  ;;  %v604_v48 = vadd.f32 %v1134_v13, %v603_v45 }
 0x18c   :  { %839 = vst [vmem:[#allocation13 + $0x20] sm:$0xff] %v819_v47   ;;  %v631_v49 = vadd.f32 %v604_v48, %v438_v44 }
 0x18e   :  { %v647_v51 = vmax.f32 %v631_v49, 0.0 }
 0x190   :  { %v663_v53 = vadd.f32 %v647_v51, %v503_v50 }
 0x191   :  { %v606_v55 = vpop.f32.mrf.mxu3 }
 0x192   :  { %679 = vst [vmem:[#allocation12 + $0x50] sm:$0xff] %v663_v53  ;;  %v607_v56 = vadd.f32 %v1134_v13, %v606_v55 }
 0x194   :  { %v632_v58 = vadd.f32 %v607_v56, %v441_v54 }
 0x196   :  { %v648_v60 = vmax.f32 %v632_v58, 0.0 }
 0x198   :  { %v664_v61 = vadd.f32 %v648_v60, %v506_v59 }
 0x199   :  { %v609_v63 = vpop.f32.mrf.mxu3 }
 0x19a   :  { %680 = vst [vmem:[#allocation12 + $0x58] sm:$0xff] %v664_v61  ;;  %v824_v1 = vpack.c.bf16 %v664_v61, %v663_v53  ;;  %v610_v2 = vadd.f32 %v1134_v13, %v609_v63 }
 0x19c   :  { %840 = vst [vmem:[#allocation13 + $0x28] sm:$0xff] %v824_v1   ;;  %v633_v3 = vadd.f32 %v610_v2, %v444_v62 }
 0x19e   :  { %v649_v6 = vmax.f32 %v633_v3, 0.0 }
 0x1a0   :  { %v665_v7 = vadd.f32 %v649_v6, %v509_v4 }
 0x1a1   :  { %v612_v9 = vpop.f32.mrf.mxu3 }
 0x1a2   :  { %681 = vst [vmem:[#allocation12 + $0x60] sm:$0xff] %v665_v7  ;;  %v613_v10 = vadd.f32 %v1134_v13, %v612_v9 }
 0x1a4   :  { %v634_v14 = vadd.f32 %v613_v10, %v447_v8 }
 0x1a6   :  { %v650_v17 = vmax.f32 %v634_v14, 0.0 }
 0x1a8   :  { %v666_v19 = vadd.f32 %v650_v17, %v512_v16 }
 0x1a9   :  { %v615_v21 = vpop.f32.mrf.mxu3 }
 0x1aa   :  { %682 = vst [vmem:[#allocation12 + $0x68] sm:$0xff] %v666_v19  ;;  %v829_v22 = vpack.c.bf16 %v666_v19, %v665_v7  ;;  %v616_v23 = vadd.f32 %v1134_v13, %v615_v21 }
 0x1ac   :  { %841 = vst [vmem:[#allocation13 + $0x30] sm:$0xff] %v829_v22   ;;  %v635_v24 = vadd.f32 %v616_v23, %v450_v20 }
 0x1ae   :  { %v651_v27 = vmax.f32 %v635_v24, 0.0 }
 0x1b0   :  { %v667_v28 = vadd.f32 %v651_v27, %v515_v25 }
 0x1b1   :  { %v618_v30 = vpop.f32.mrf.mxu3 }
 0x1b2   :  { %683 = vst [vmem:[#allocation12 + $0x70] sm:$0xff] %v667_v28  ;;  %v619_v32 = vadd.f32 %v1134_v13, %v618_v30 }
 0x1b4   :  { %v636_v33 = vadd.f32 %v619_v32, %v453_v29 }
 0x1b6   :  { %v652_v35 = vmax.f32 %v636_v33, 0.0 }
 0x1b8   :  { %v668_v11 = vadd.f32 %v652_v35, %v518_v34 }
 0x1ba   :  { %684 = vst [vmem:[#allocation12 + $0x78] sm:$0xff] %v668_v11  ;;  %v834_v13 = vpack.c.bf16 %v668_v11, %v667_v28 }
 0x1bb   :  { %729 = dma.vmem_to_hbm [thread:$0]  %s722_s6, 2048, %s724_s17, [#allocation5], %s1039_s19, %s1039_s19, %s1040_s20  }
 0x1bc   :  { %842 = vst [vmem:[#allocation13 + $0x38] sm:$0xff] %v834_v13  }
 0x1bd   :  { %742 = dma.vmem_to_hbm [thread:$0]  %s735_s18, 1024, %s737_s23, [#allocation14], %s1036_s10, %s1036_s10, %s1037_s11  }
 0x1be   :  { %1031 = dma.done.wait [#allocation5], 2048  }
 0x1bf   :  { %1032 = vsyncadd [#allocation5], 4294965248 }
 0x1c0   :  { %1033 = dma.done.wait [#allocation14], 1024  }
 0x1c1   :  { %1034 = vsyncadd [#allocation14], 4294966272 }
 0x1c2   :  { %751 = vsyncpa [#allocation4], 1 }
 0x1c3   :  { %752 = vsyncpa [#allocation7], 1 }
 0x1c4   :  { %753 = vsyncpa [#allocation10], 1 }
 0x1c5   :  { %754 = vsyncpa [#allocation5], 1 }
 0x1c6   :  { %755 = vsyncpa [#allocation14], 1 }

</bundles_post_ra>
